<compile_context>
chip_gen: v5e
topology: v5e:2x2
jax: 0.10.0
libtpu: 0.0.40
codegen_flags: <defaults>
</compile_context>

<pallas_src>
import jax
import jax.numpy as jnp
import numpy as np
from jax.experimental import pallas as pl
from jax.experimental.pallas import tpu as pltpu


def _probe_kernel(x_ref, m_ref, w_ref, out_ref):
    # x_ref: (TB, L, D)   m_ref: (TB, 1, L) int32   w_ref: (P, D)
    # out_ref: (TB, P, D)
    x = x_ref[...]                      # (TB, L, D), native dtype
    w = w_ref[...]                      # (P, D),     native dtype
    m = m_ref[...]                      # (TB, 1, L) int32 (1 = keep, 0 = mask)

    # scores[b, p, l] = sum_d x[b, l, d] * w[p, d]   -> (TB, P, L), f32 acc.
    scores = jnp.einsum("bld,pd->bpl", x, w,
                        preferred_element_type=jnp.float32)

    # masked_fill(~mask, -inf); mask broadcasts over the probe (sublane) axis.
    scores = jnp.where(m > 0, scores, -jnp.inf)

    # Numerically-stable softmax numerator; normalization deferred past the
    # context matmul so the big broadcasted multiply is (P, D), not (P, L).
    s_max = jnp.max(scores, axis=-1, keepdims=True)        # (TB, P, 1)
    p = jnp.exp(scores - s_max)                            # (TB, P, L)
    denom = jnp.sum(p, axis=-1, keepdims=True)             # (TB, P, 1)

    # Unnormalized context: (TB, P, L) @ (TB, L, D) -> (TB, P, D) on the MXU,
    # operands in the input dtype, f32 accumulation.
    ctx = jnp.einsum("bpl,bld->bpd", p.astype(x.dtype), x,
                     preferred_element_type=jnp.float32)   # (TB, P, D)

    # 1/denom on the EUP (separate VLIW slot) + one Newton step to recover
    # near-exact precision (error ~ e^2 of the approximate estimate).
    r = pl.reciprocal(denom, approx=True)                  # (TB, P, 1)
    r = r * (2.0 - denom * r)

    out_ref[...] = (ctx * r).astype(out_ref.dtype)


def _pick_batch_tile(B, L, D, P, itemsize, vmem_budget_bytes):
    """Largest divisor of B whose tile fits the VMEM budget (double-buffered)."""
    per_sample = (2 * L * D * itemsize      # x tile, double-buffered
                  + 2 * P * D * 4           # out tile (f32 compute), dbl-buffered
                  + 2 * L * 4               # int32 mask tile, double-buffered
                  + 3 * P * L * 4)          # scores / exp / where intermediates
    cap = max(1, vmem_budget_bytes // max(1, per_sample))
    if B >= 2:
        # Keep at least two grid steps so the "parallel" batch axis can be
        # sharded across v7x's 2 TensorCores (no-op on v5e/v6e).
        cap = max(1, min(cap, B // 2))
    tb = 1
    for t in range(1, min(B, cap) + 1):
        if B % t == 0:
            tb = t
    return tb


def probe_forward(birnn_outputs, masks, weight,
                  *, vmem_budget_bytes=36 * 1024 * 1024):
    """birnn_outputs: (B, L, D); masks: (B, 1, L) or (B, L) bool; weight: (P, D)."""
    B, L, D = birnn_outputs.shape
    P = weight.shape[0]
    masks_i32 = masks.reshape(B, 1, L).astype(jnp.int32)

    itemsize = birnn_outputs.dtype.itemsize
    tb = _pick_batch_tile(B, L, D, P, itemsize, vmem_budget_bytes)
    grid = (B // tb,)

    # Advisory cost hint for XLA's scheduler around the custom call.
    cost = pl.CostEstimate(
        flops=2 * B * P * L * D * 2,                 # score matmul + context matmul
        transcendentals=B * P * L,                   # exp
        bytes_accessed=(B * L * D * itemsize         # x
                        + P * D * itemsize           # weight
                        + B * L * 4                  # mask (int32)
                        + B * P * D * itemsize),     # output
    )

    return pl.pallas_call(
        _probe_kernel,
        out_shape=jax.ShapeDtypeStruct((B, P, D), birnn_outputs.dtype),
        grid_spec=pltpu.PrefetchScalarGridSpec(
            num_scalar_prefetch=0,
            grid=grid,
            in_specs=[
                pl.BlockSpec((tb, L, D), lambda b: (b, 0, 0)),   # x batch tile
                pl.BlockSpec((tb, 1, L), lambda b: (b, 0, 0)),   # mask batch tile
                pl.BlockSpec((P, D), lambda b: (0, 0)),          # weight, resident
            ],
            out_specs=pl.BlockSpec((tb, P, D), lambda b: (b, 0, 0)),
        ),
        compiler_params=pltpu.CompilerParams(
            dimension_semantics=("parallel",),
            # Raise the scoped-VMEM ceiling above the 16/32 MiB defaults while
            # staying well under v7x's 64 MiB physical VMEM per TensorCore.
            vmem_limit_bytes=48 * 1024 * 1024,
        ),
        cost_estimate=cost,
    )(birnn_outputs, masks_i32, weight)


def _reference(birnn_outputs, masks, weight):
    # Pure-JAX reference reproducing the PyTorch forward.
    B, L, D = birnn_outputs.shape
    scores = jnp.einsum("bld,pd->bpl", birnn_outputs, weight)
    scores = jnp.where(masks.reshape(B, 1, L), scores, -jnp.inf)
    attn = jax.nn.softmax(scores, axis=-1)
    return jnp.einsum("bpl,bld->bpd", attn, birnn_outputs)


if __name__ == "__main__":
    # Small but lane-dense shapes: batch=4, seq=128, hidden(dim)=128, n_probes=8.
    # (D and L multiples of 128 keep loads/stores unmasked.)
    B, L, D, P = 4, 128, 128, 8

    key = jax.random.PRNGKey(0)
    k_x, k_w = jax.random.split(key, 2)

    birnn_outputs = jax.random.normal(k_x, (B, L, D), dtype=jnp.float32)

    # Deterministic xavier_uniform-style weight for Linear(dim, n_probes): (P, D)
    bound = float(np.sqrt(6.0 / (D + P)))
    weight = jax.random.uniform(k_w, (P, D), dtype=jnp.float32,
                                minval=-bound, maxval=bound)

    # Valid-length style mask: first lengths[b] positions are valid (none empty).
    lengths = jnp.array([100, 128, 64, 96], dtype=jnp.int32)
    pos = jnp.arange(L)[None, :]                     # (1, L)
    masks = (pos < lengths[:, None])[:, None, :]     # (B, 1, L) bool

    out = probe_forward(birnn_outputs, masks, weight)
    out = jax.block_until_ready(out)

    ref = _reference(birnn_outputs, masks, weight)
    assert out.shape == (B, P, D)
    # Tolerance accounts for TPU default MXU precision and the Newton-refined
    # approximate reciprocal.
    np.testing.assert_allclose(np.asarray(out), np.asarray(ref),
                               rtol=1e-3, atol=1e-3)

    print("KERNEL_OK")
</pallas_src>

<mosaic_0001>
module attributes {stable_mosaic.version = 11 : i64} {
  func.func @_probe_kernel(%arg0: i32, %arg1: memref<2x128x128xf32, #tpu.memory_space<vmem>>, %arg2: memref<2x1x128xi32, #tpu.memory_space<vmem>>, %arg3: memref<8x128xf32, #tpu.memory_space<vmem>>, %arg4: memref<2x8x128xf32, #tpu.memory_space<vmem>>) attributes {dimension_semantics = [#tpu.dimension_semantics<parallel>], iteration_bounds = array<i64: 2>, scalar_prefetch = 0 : i64, scratch_operands = 0 : i64, tpu.core_type = #tpu.core_type<tc>, window_params = [{transform_indices = @transform_0, window_bounds = array<i64: 2, 128, 128>}, {transform_indices = @transform_1, window_bounds = array<i64: 2, 1, 128>}, {pipeline_mode = #tpu.pipeline_mode<synchronous>, transform_indices = @transform_2, window_bounds = array<i64: 8, 128>}, {transform_indices = @transform_3, window_bounds = array<i64: 2, 8, 128>}]} {
    %c0 = arith.constant 0 : index
    %c0_0 = arith.constant 0 : index
    %c0_1 = arith.constant 0 : index
    %0 = vector.load %arg1[%c0, %c0_0, %c0_1] : memref<2x128x128xf32, #tpu.memory_space<vmem>>, vector<2x128x128xf32>
    %c0_2 = arith.constant 0 : index
    %c0_3 = arith.constant 0 : index
    %1 = vector.load %arg3[%c0_2, %c0_3] : memref<8x128xf32, #tpu.memory_space<vmem>>, vector<8x128xf32>
    %c0_4 = arith.constant 0 : index
    %c0_5 = arith.constant 0 : index
    %c0_6 = arith.constant 0 : index
    %2 = vector.load %arg2[%c0_4, %c0_5, %c0_6] : memref<2x1x128xi32, #tpu.memory_space<vmem>>, vector<2x1x128xi32>
    "tpu.trace_start"() <{level = 10 : i32, message = "bld,pd->bpl"}> : () -> ()
    %cst = arith.constant dense<0.000000e+00> : vector<8x2x128xf32>
    %3 = tpu.matmul %1, %0, %cst {dimension_numbers = #tpu.dot_dimension_numbers<[1], [2], [0], [0, 1], [0, 0, 1, 0, 1, 1], [], []>} : vector<8x128xf32>, vector<2x128x128xf32>, vector<8x2x128xf32> -> vector<8x2x128xf32>
    %4 = tpu.transpose %3, [1, 0, 2] : vector<8x2x128xf32> -> vector<2x8x128xf32>
    %c0_i32 = arith.constant 0 : i32
    "tpu.trace_stop"() : () -> ()
    %5 = vector.broadcast %c0_i32 : i32 to vector<2x1x128xi32>
    %6 = arith.cmpi sgt, %2, %5 : vector<2x1x128xi32>
    %cst_7 = arith.constant 0xFF800000 : f32
    %7 = vector.shape_cast %6 : vector<2x1x128xi1> to vector<2x1x128xi1>
    %8 = vector.broadcast %7 : vector<2x1x128xi1> to vector<2x8x128xi1>
    %9 = vector.broadcast %cst_7 : f32 to vector<2x8x128xf32>
    %10 = arith.select %8, %4, %9 : vector<2x8x128xi1>, vector<2x8x128xf32>
    %cst_8 = arith.constant dense<0xFF800000> : vector<2x8xf32>
    %11 = vector.multi_reduction <maximumf>, %10, %cst_8 [2] : vector<2x8x128xf32> to vector<2x8xf32>
    %12 = vector.shape_cast %11 : vector<2x8xf32> to vector<2x8x1xf32>
    %13 = vector.broadcast %12 : vector<2x8x1xf32> to vector<2x8x128xf32>
    %14 = arith.subf %10, %13 : vector<2x8x128xf32>
    %15 = math.exp %14 : vector<2x8x128xf32>
    %cst_9 = arith.constant dense<0.000000e+00> : vector<2x8xf32>
    %16 = vector.multi_reduction <add>, %15, %cst_9 [2] : vector<2x8x128xf32> to vector<2x8xf32>
    %17 = vector.shape_cast %16 : vector<2x8xf32> to vector<2x8x1xf32>
    "tpu.trace_start"() <{level = 10 : i32, message = "bpl,bld->bpd"}> : () -> ()
    %cst_10 = arith.constant dense<0.000000e+00> : vector<2x8x128xf32>
    %18 = tpu.matmul %15, %0, %cst_10 {dimension_numbers = #tpu.dot_dimension_numbers<[2], [1], [1], [2], [0, 0, 0, 1, 1, 2], [0], [0]>} : vector<2x8x128xf32>, vector<2x128x128xf32>, vector<2x8x128xf32> -> vector<2x8x128xf32>
    "tpu.trace_stop"() : () -> ()
    %19 = tpu.reciprocal %17 {approx = true} : vector<2x8x1xf32> -> vector<2x8x1xf32>
    %20 = arith.mulf %17, %19 : vector<2x8x1xf32>
    %cst_11 = arith.constant 2.000000e+00 : f32
    %21 = vector.broadcast %cst_11 : f32 to vector<2x8x1xf32>
    %22 = arith.subf %21, %20 : vector<2x8x1xf32>
    %23 = arith.mulf %19, %22 : vector<2x8x1xf32>
    %24 = vector.broadcast %23 : vector<2x8x1xf32> to vector<2x8x128xf32>
    %25 = arith.mulf %18, %24 : vector<2x8x128xf32>
    %c0_12 = arith.constant 0 : index
    %c0_13 = arith.constant 0 : index
    %c0_14 = arith.constant 0 : index
    %26 = vector.load %arg4[%c0_12, %c0_13, %c0_14] : memref<2x8x128xf32, #tpu.memory_space<vmem>>, vector<2x8x128xf32>
    tpu.vector_store %arg4[%c0_12, %c0_13, %c0_14], %25 {strides = array<i32>} : memref<2x8x128xf32, #tpu.memory_space<vmem>>, vector<2x8x128xf32>,
    return
  }
  func.func @transform_0(%arg0: i32) -> (i32, i32, i32) {
    %c0_i32 = arith.constant 0 : i32
    %c0_i32_0 = arith.constant 0 : i32
    %c0_i32_1 = arith.constant 0 : i32
    return %arg0, %c0_i32, %c0_i32_0 : i32, i32, i32
  }
  func.func @transform_1(%arg0: i32) -> (i32, i32, i32) {
    %c0_i32 = arith.constant 0 : i32
    %c0_i32_0 = arith.constant 0 : i32
    %c0_i32_1 = arith.constant 0 : i32
    return %arg0, %c0_i32, %c0_i32_0 : i32, i32, i32
  }
  func.func @transform_2(%arg0: i32) -> (i32, i32) {
    %c0_i32 = arith.constant 0 : i32
    %c0_i32_0 = arith.constant 0 : i32
    %c0_i32_1 = arith.constant 0 : i32
    return %c0_i32, %c0_i32_0 : i32, i32
  }
  func.func @transform_3(%arg0: i32) -> (i32, i32, i32) {
    %c0_i32 = arith.constant 0 : i32
    %c0_i32_0 = arith.constant 0 : i32
    %c0_i32_1 = arith.constant 0 : i32
    return %arg0, %c0_i32, %c0_i32_0 : i32, i32, i32
  }
}

</mosaic_0001>

<bundles_post_ra>
// kernel: tpu_custom_call.1
= control target key start
LH: loop header
LB: loop body
LE: loop exit
PB: predicated region body
PF: predicated region fallthrough
CT: control target
= control target key end

     0   :  { %s1170_s0 = inlined_call_operand.hbm [shape: f32[4,128,128], index: 0, kind: input, shape index: {}]   ;;  %s1171_s1 = inlined_call_operand.hbm [shape: s32[4,1,128], index: 1, kind: input, shape index: {}]   ;;  %s1172_s2 = inlined_call_operand.hbm [shape: f32[8,128], index: 2, kind: input, shape index: {}]   ;;  %s1173_s3 = inlined_call_operand.hbm [shape: f32[4,8,128], index: 3, kind: output, shape index: {}]  }
   0x1   :  { %1174 = sst [smem:[#allocation14_spill]] %s1170_s0 }
   0x2   :  { %1175 = sst [smem:[#allocation15_spill]] %s1172_s2 }
   0x3   :  { %8 = vsyncpa [#allocation3], 0 }
   0x4   :  { %10 = vsyncpa [#allocation3 + $0x1], 0 }
   0x5   :  { %11 = vsyncpa [#allocation6], 0 }
   0x6   :  { %13 = vsyncpa [#allocation6 + $0x1], 0 }
   0x7   :  { %14 = vsyncpa [#allocation4], 0 }
   0x8   :  { %16 = vsyncpa [#allocation4 + $0x1], 0  ;;  %s927_s12 = smov 0   ;;  %s929_s13 = smov 0  }
   0x9   :  { %s931_s14 = smov 0   ;;  %s933_s15 = smov 0  }
   0xa LB: > { %s948_s16 = sadd.s32 4294967295, %s894_s15   ;;  %s627_s17 = sadd.s32 4294967294, %s894_s15   ;;  %s894_s15 = sphi %s933_s15, %s1190_s15   ;;  %s890_s14 = sphi %s931_s14, %s1189_s14   ;;  %s886_s13 = sphi %s929_s13, %s1188_s13   ;;  %s882_s12 = sphi %s927_s12, %s1187_s12  }
   0xb   : > { %s952_s18 = sadd.s32 1, %s894_s15   ;;  %s29_s19 = sadd.s32 1, %s890_s14 }
   0xc   : > { %s26_s20 = ssub.s32 %s894_s15, %s952_s18  ;;  %p36_p0 = scmp.ne.s32.totalorder %s890_s14, %s886_s13 }
   0xd   : > { %p27_p1 = scmp.eq.s32.totalorder %s26_s20, 0  ;;  %p37_p2 = scmp.eq.s32.totalorder %s894_s15, 0 }
   0xe   : > { %p42_p3 = scmp.ne.s32.totalorder %s886_s13, %s882_s12  ;;  %p43_p4 = scmp.eq.s32.totalorder %s948_s16, 0 }
   0xf   : > { %s964_s21 = scalar_select %p27_p1, %s890_s14, %s29_s19  }
  0x10   : > { %p966_p5 = por %p37_p2, %p36_p0  ;;  %p972_p6 = por %p43_p4, %p42_p3 }
  0x11   : > { %1176 = sst [smem:[#allocation13_spill]] %s964_s21  ;;  %p113_p7 = scmp.eq.s32.totalorder %s948_s16, 1 }
  0x12   : > { %p119_p8 = scmp.eq.s32.totalorder %s627_s17, 1  ;;  %p628_p9 = scmp.ge.s32.totalorder %s894_s15, 1 }
  0x13   : > { %p126_p10 = scmp.lt.s32.totalorder %s894_s15, 3  ;;  %p979_p11 = por %p113_p7, %p36_p0 }
  0x14   : > { %p983_p12 = por %p119_p8, %p42_p3  ;;  %s1182_s2 = sld [smem:[#allocation15_spill]] }
  0x15   : > { %p987_p13 = pnand %p628_p9, %p126_p10  ;;  %s896_s30 = smov [#allocation7]  }
  0x16   : > { %s140_s4 = sshll.u32 %s896_s30, 4  ;;  %p676_p3 = scmp.lt.s32.totalorder %s894_s15, 2  ;;  %s141_s4 = int_to_ptr.vmem [resolvable:$true] %s140_s4 }
  0x17   : > { %p660_p1 = pneg %p987_p13  ;;  %s1001_s5 = sand.u32 1, %s890_s14  }
  0x18   : > { %p1005_p7 = pnand %p676_p3, %p966_p5  ;;  %s631_s7 = sshll.u32 %s1001_s5, 8 }
  0x19   : > { %p661_p2 = pnand %p660_p1, %p43_p4  ;;  %s648_s8 = sshll.u32 %s894_s15, 8 }
  0x1a   : > { %s138_s29 = sshll.u32 %s1182_s2, 4  ;;  %s1184_s0 = sld [smem:[#allocation14_spill]]  ;;  %s139_s29 = int_to_ptr.hbm [resolvable:$true] %s138_s29 }
  0x1b   : > { %663 = dma.hbm_to_vmem [thread:$0]  (!%p661_p2), %s139_s29, 128, %s141_s4, [#allocation6]  }
  0x1c   : > { %s155_s19 = scalar_lea.vmem [#allocation2], %s631_s7  ;;  %s152_s27 = scalar_lea.sflag [#allocation3], %s1001_s5 }
  0x1d   : > { %s164_s20 = sshll.u32 %s155_s19, 4  ;;  %p764_p8 = pneg %p1005_p7  ;;  %s165_s20 = int_to_ptr.vmem [resolvable:$true] %s164_s20 }
  0x20   : > { %s161_s11 = scalar_lea.hbm %s1184_s0, %s648_s8  ;;  %s767_s4 = scalar_lea.hbm %s1184_s0, 512 }
  0x21   : > { %s162_s17 = sshll.u32 %s161_s11, 4  ;;  %s163_s17 = int_to_ptr.hbm [resolvable:$true] %s162_s17 }
  0x22   : > { %s760_s28 = sshra.s32 %s163_s17, 4  ;;  %s761_s28 = int_to_ptr.hbm [resolvable:$true] %s760_s28 }
  0x23   : > { %s762_s22 = scalar_lea.hbm %s761_s28, 256  ;;  %p768_p1 = scmp.lt.s32.totalorder %s761_s28, %s1184_s0 }
  0x24   : > { %p763_p5 = scmp.ne.s32.totalorder %s761_s28, %s762_s22  ;;  %p769_p2 = scmp.lt.s32.totalorder %s767_s4, %s762_s22 }
  0x26   : > { %p765_p9 = pnand %p764_p8, %p763_p5  ;;  %p770_p3 = por %p769_p2, %p768_p1 }
  0x28   : > { %p766_p10 = pneg %p765_p9 }
  0x2a   : > { %p771_p0 = pnand %p770_p3, %p766_p10 }
  0x2c   : > { %774 = shalt.err (!%p771_p0)
}
  0x2d   : > { %s897_s9 = smov 128   ;;  %s898_s10 = smov 8  }
  0x2e   : > { %667 = dma.hbm_to_vmem [thread:$0]  (!%p1005_p7), %s163_s17, 4096, %s165_s20, %s152_s27, %s897_s9, %s897_s9, %s898_s10  }
  0x2f   : > { %s174_s11 = sand.u32 1, %s894_s15   ;;  %s635_s19 = sshll.u32 %s1001_s5, 1 }
  0x30   : > { %s636_s29 = sshll.u32 %s894_s15, 1  ;;  %s178_s30 = scalar_lea.vmem [#allocation5], %s635_s19 }
  0x31   : > { %s185_s2 = sshll.u32 %s178_s30, 4  ;;  %s182_s22 = scalar_lea.hbm %s1171_s1, %s636_s29  ;;  %s186_s2 = int_to_ptr.vmem [resolvable:$true] %s185_s2 }
  0x32   : > { %s183_s4 = sshll.u32 %s182_s22, 4  ;;  %s175_s7 = scalar_lea.sflag [#allocation6], %s174_s11  ;;  %s184_s4 = int_to_ptr.hbm [resolvable:$true] %s183_s4 }
  0x33   : > { %s790_s0 = sshra.s32 %s184_s4, 4  ;;  %s797_s20 = scalar_lea.hbm %s1171_s1, 4  ;;  %s791_s0 = int_to_ptr.hbm [resolvable:$true] %s790_s0 }
  0x34   : > { %s792_s21 = scalar_lea.hbm %s791_s0, 2  ;;  %p798_p10 = scmp.lt.s32.totalorder %s791_s0, %s1171_s1 }
  0x35   : > { %p793_p0 = scmp.ne.s32.totalorder %s791_s0, %s792_s21  ;;  %p799_p1 = scmp.lt.s32.totalorder %s797_s20, %s792_s21 }
  0x37   : > { %p795_p5 = pnand %p793_p0, %p764_p8  ;;  %p800_p2 = por %p799_p1, %p798_p10 }
  0x39   : > { %p796_p9 = pneg %p795_p5 }
  0x3b   : > { %p801_p3 = pnand %p800_p2, %p796_p9 }
  0x3d   : > { %804 = shalt.err (!%p801_p3)
}
  0x3e   : > { %s899_s10 = smov 16   ;;  %s900_s11 = smov 1  }
  0x3f   : > { %670 = dma.hbm_to_vmem [thread:$0]  (!%p1005_p7), %s184_s4, 32, %s186_s2, %s175_s7, %s899_s10, %s899_s10, %s900_s11  }
  0x40   : > { %197 = sbr.rel (%p987_p13) target bundleno = 567 (0x237), region = 32  ;;  %s1048_s19 = sand.u32 (!%p987_p13), 1, %s886_s13  }
  0x41   : > { %s638_s29 = sshll.u32 (!%p987_p13), %s1048_s19, 8  ;;  %s200_s0 = scalar_lea.sflag (!%p987_p13), [#allocation3], %s1048_s19 }
  0x42   : > { %s1052_s21 = scalar_lea.vmem (!%p987_p13), [#allocation2], %s638_s29 }
  0x45   : > { %865 = dma.done.wait (%p972_p6), %s200_s0, 4096  }
  0x46   : > { %867 = vsyncadd (%p972_p6), %s200_s0, 4294963200  ;;  %s209_s2 = sand.u32 1, %s948_s16   ;;  %s639_s26 = sshll.u32 %s1048_s19, 1 }
  0x47   : > { %s210_s6 = scalar_lea.sflag [#allocation6], %s209_s2  ;;  %s1060_s30 = scalar_lea.vmem [#allocation5], %s639_s26 }
  0x48   : > { %869 = dma.done.wait (%p972_p6), %s210_s6, 32  }
  0x49   : > { %871 = vsyncadd (%p972_p6), %s210_s6, 4294967264 }
  0x4a   : > { %873 = dma.done.wait (%p43_p4), [#allocation6], 128  }
  0x4b   : > { %875 = vsyncadd (%p43_p4), [#allocation6], 4294967168  ;;  %v265_v0 = vld [vmem:[%s1052_s21 + $0x78] sm:$0xff]  ;;  %v264_v2 = vld [vmem:[%s1052_s21 + $0x70] sm:$0xff]  ;;  %v901_v33 = vmov 1983009808  }
  0x4c   : > { %v281_v1 = vld [vmem:[%s1052_s21 + $0xf8] sm:$0xff]  ;;  %300 = vmatpush.xpose.msra.mxu0 %v265_v0  ;;  %v280_v3 = vld [vmem:[%s1052_s21 + $0xf0] sm:$0xff]  ;;  %454 = vmatpush.msra.mxu2 %v265_v0  ;;  %v263_v4 = vld [vmem:[%s1052_s21 + $0x68] sm:$0xff]  ;;  %v288_v34 = vunpack.c.l.s4 %v901_v33  ;;  %v902_v36 = vmov 0.0   ;;  %v903_v38 = vmov 1934713408  }
  0x4d   : > { %320 = vmatpush.xpose.msra.mxu1 %v281_v1  ;;  %474 = vmatpush.msra.mxu3 %v281_v1  ;;  %v279_v5 = vld [vmem:[%s1052_s21 + $0xe8] sm:$0xff]  ;;  %v262_v6 = vld [vmem:[%s1052_s21 + $0x60] sm:$0xff]  ;;  %v261_v8 = vld [vmem:[%s1052_s21 + $0x58] sm:$0xff]  ;;  %v294_v39 = vunpack.c.l.s4 %v903_v38  ;;  %vm285_vm0 = vcmask 1047556   ;;  %s641_s23 = sshll.u32 %s1048_s19, 4  ;;  %s649_s8 = sshll.u32 %s948_s16, 4 }
  0x4e   : > { %455 = vmatpush.msra.mxu2 %v264_v2  ;;  %v278_v7 = vld [vmem:[%s1052_s21 + $0xe0] sm:$0xff]  ;;  %v277_v9 = vld [vmem:[%s1052_s21 + $0xd8] sm:$0xff]  ;;  %v260_v10 = vld [vmem:[%s1052_s21 + $0x50] sm:$0xff]  ;;  %v1102_v35 = vunpack.c.0.s8 %v288_v34  ;;  %s518_s4 = scalar_lea.hbm %s1173_s3, %s649_s8  ;;  %s246_s7 = scalar_lea.vmem [#allocation8], %s641_s23 }
  0x4f   : > { %475 = vmatpush.msra.mxu3 %v280_v3  ;;  %v276_v11 = vld [vmem:[%s1052_s21 + $0xd0] sm:$0xff]  ;;  %v259_v12 = vld [vmem:[%s1052_s21 + $0x48] sm:$0xff]  ;;  %v258_v14 = vld [vmem:[%s1052_s21 + $0x40] sm:$0xff]  ;;  %v295_v41 = vunpack.c.0.s8 %v294_v39  ;;  %s519_s5 = sshll.u32 %s246_s7, 4  ;;  %s521_s17 = sshll.u32 %s518_s4, 4  ;;  %s520_s5 = int_to_ptr.vmem [resolvable:$true] %s519_s5  ;;  %s522_s17 = int_to_ptr.hbm [resolvable:$true] %s521_s17 }
  0x50   : > { %301 = vmatpush.xpose.msra.mxu0 %v264_v2  ;;  %456 = vmatpush.msra.mxu2 %v263_v4  ;;  %v275_v13 = vld [vmem:[%s1052_s21 + $0xc8] sm:$0xff]  ;;  %v274_v15 = vld [vmem:[%s1052_s21 + $0xc0] sm:$0xff]  ;;  %v257_v16 = vld [vmem:[%s1052_s21 + $0x38] sm:$0xff]  ;;  %v290_v37 = vperm.slane %v902_v36, %v1102_v35  ;;  %s507_s16 = scalar_lea.sflag [#allocation4], %s1048_s19  ;;  %s834_s20 = sshra.s32 %s522_s17, 4  ;;  %s835_s20 = int_to_ptr.hbm [resolvable:$true] %s834_s20 }
  0x51   : > { %321 = vmatpush.xpose.msra.mxu1 %v280_v3  ;;  %476 = vmatpush.msra.mxu3 %v279_v5  ;;  %v273_v17 = vld [vmem:[%s1052_s21 + $0xb8] sm:$0xff]  ;;  %v256_v18 = vld [vmem:[%s1052_s21 + $0x30] sm:$0xff]  ;;  %v255_v20 = vld [vmem:[%s1052_s21 + $0x28] sm:$0xff]  ;;  %s836_s27 = scalar_lea.hbm %s835_s20, 16  ;;  %s840_s11 = scalar_lea.hbm %s1173_s3, 32 }
  0x52   : > { %457 = vmatpush.msra.mxu2 %v262_v6  ;;  %v272_v19 = vld [vmem:[%s1052_s21 + $0xb0] sm:$0xff]  ;;  %v271_v21 = vld [vmem:[%s1052_s21 + $0xa8] sm:$0xff]  ;;  %v254_v22 = vld [vmem:[%s1052_s21 + $0x20] sm:$0xff]  ;;  %v291_v40 = vrot.slane %v290_v37, 4  ;;  %p837_p4 = scmp.ne.s32.totalorder %s835_s20, %s836_s27  ;;  %p841_p7 = scmp.lt.s32.totalorder %s835_s20, %s1173_s3 }
  0x53   : > { %477 = vmatpush.msra.mxu3 %v278_v7  ;;  %v270_v23 = vld [vmem:[%s1052_s21 + $0xa0] sm:$0xff]  ;;  %v253_v24 = vld [vmem:[%s1052_s21 + $0x18] sm:$0xff]  ;;  %v252_v26 = vld [vmem:[%s1052_s21 + $0x10] sm:$0xff]  ;;  %p842_p8 = scmp.lt.s32.totalorder %s840_s11, %s836_s27 }
  0x54   : > { %302 = vmatpush.xpose.msra.mxu0 %v263_v4  ;;  %458 = vmatpush.msra.mxu2 %v261_v8  ;;  %v269_v25 = vld [vmem:[%s1052_s21 + $0x98] sm:$0xff]  ;;  %v268_v27 = vld [vmem:[%s1052_s21 + $0x90] sm:$0xff]  ;;  %v251_v28 = vld [vmem:[%s1052_s21 + $0x8] sm:$0xff]  ;;  %v292_v42 = vsel %vm285_vm0, %v291_v40, %v290_v37  ;;  %p838_p6 = pnand %p837_p4, %p979_p11 }
  0x55   : > { %322 = vmatpush.xpose.msra.mxu1 %v279_v5  ;;  %478 = vmatpush.msra.mxu3 %v277_v9  ;;  %v267_v29 = vld [vmem:[%s1052_s21 + $0x88] sm:$0xff]  ;;  %v250_v30 = vld [vmem:[%s1052_s21] sm:$0xff]  ;;  %v296_v43 = vperm.slane %v292_v42, %v295_v41  ;;  %p843_p0 = por %p842_p8, %p841_p7 }
  0x56   : > { %459 = vmatpush.msra.mxu2 %v260_v10  ;;  %v266_v31 = vld [vmem:[%s1052_s21 + $0x80] sm:$0xff]  ;;  %p839_p13 = pneg %p838_p6 }
  0x57   : > { %479 = vmatpush.msra.mxu3 %v276_v11  ;;  %v282_v32 = vld [vmem:[#allocation7] sm:$0xff]  ;;  %v297_v44 = vrot.slane %v296_v43, 4 }
  0x58   : > { %303 = vmatpush.xpose.msra.mxu0 %v262_v6  ;;  %460 = vmatpush.msra.mxu2 %v259_v12  ;;  %p844_p5 = pnand %p843_p0, %p839_p13 }
  0x59   : > { %323 = vmatpush.xpose.msra.mxu1 %v278_v7  ;;  %480 = vmatpush.msra.mxu3 %v275_v13  ;;  %v298_v45 = vsel %vm285_vm0, %v297_v44, %v296_v43  ;;  %v299_v46 = vsel %vm285_vm0, %v296_v43, %v297_v44 }
  0x5a   : > { %461 = vmatpush.msra.mxu2 %v258_v14 }
  0x5b   : > { %481 = vmatpush.msra.mxu3 %v274_v15 }
  0x5c   : > { %304 = vmatpush.xpose.msra.mxu0 %v261_v8  ;;  %462 = vmatpush.msra.mxu2 %v257_v16 }
  0x5d   : > { %324 = vmatpush.xpose.msra.mxu1 %v277_v9  ;;  %482 = vmatpush.msra.mxu3 %v273_v17 }
  0x5e   : > { %463 = vmatpush.msra.mxu2 %v256_v18 }
  0x5f   : > { %483 = vmatpush.msra.mxu3 %v272_v19 }
  0x60   : > { %305 = vmatpush.xpose.msra.mxu0 %v260_v10  ;;  %464 = vmatpush.msra.mxu2 %v255_v20 }
  0x61   : > { %325 = vmatpush.xpose.msra.mxu1 %v276_v11  ;;  %484 = vmatpush.msra.mxu3 %v271_v21 }
  0x62   : > { %465 = vmatpush.msra.mxu2 %v254_v22 }
  0x63   : > { %485 = vmatpush.msra.mxu3 %v270_v23 }
  0x64   : > { %306 = vmatpush.xpose.msra.mxu0 %v259_v12  ;;  %466 = vmatpush.msra.mxu2 %v253_v24 }
  0x65   : > { %326 = vmatpush.xpose.msra.mxu1 %v275_v13  ;;  %486 = vmatpush.msra.mxu3 %v269_v25  ;;  %v283_v13 = vld [vmem:[%s1060_s30] sm:$0x1] }
  0x66   : > { %467 = vmatpush.msra.mxu2 %v252_v26  ;;  %vm430_vm1 = vcmp.gt.s32.totalorder %v283_v13, 0 }
  0x67   : > { %487 = vmatpush.msra.mxu3 %v268_v27 }
  0x68   : > { %307 = vmatpush.xpose.msra.mxu0 %v258_v14  ;;  %468 = vmatpush.msra.mxu2 %v251_v28 }
  0x69   : > { %327 = vmatpush.xpose.msra.mxu1 %v274_v15  ;;  %488 = vmatpush.msra.mxu3 %v267_v29 }
  0x6a   : > { %469 = vmatpush.msra.mxu2 %v250_v30 }
  0x6b   : > { %489 = vmatpush.msra.mxu3 %v266_v31 }
  0x6c   : > { %308 = vmatpush.xpose.msra.mxu0 %v257_v16 }
  0x6d   : > { %328 = vmatpush.xpose.msra.mxu1 %v273_v17 }
  0x70   : > { %309 = vmatpush.xpose.msra.mxu0 %v256_v18 }
  0x71   : > { %329 = vmatpush.xpose.msra.mxu1 %v272_v19 }
  0x74   : > { %310 = vmatpush.xpose.msra.mxu0 %v255_v20 }
  0x75   : > { %330 = vmatpush.xpose.msra.mxu1 %v271_v21 }
  0x78   : > { %311 = vmatpush.xpose.msra.mxu0 %v254_v22 }
  0x79   : > { %331 = vmatpush.xpose.msra.mxu1 %v270_v23 }
  0x7c   : > { %312 = vmatpush.xpose.msra.mxu0 %v253_v24 }
  0x7d   : > { %332 = vmatpush.xpose.msra.mxu1 %v269_v25  ;;  %v904_v25 = vmov 0  }
  0x80   : > { %313 = vmatpush.xpose.msra.mxu0 %v252_v26  ;;  %v432_v26 = vsel %vm430_vm1, 1, %v904_v25 }
  0x81   : > { %333 = vmatpush.xpose.msra.mxu1 %v268_v27 }
  0x84   : > { %314 = vmatpush.xpose.msra.mxu0 %v251_v28 }
  0x85   : > { %334 = vmatpush.xpose.msra.mxu1 %v267_v29 }
  0x88   : > { %315 = vmatpush.xpose.msra.mxu0 %v250_v30  ;;  %v284_v30 = vld [vmem:[%s1060_s30 + $0x1] sm:$0x1] }
  0x89   : > { %335 = vmatpush.xpose.msra.mxu1 %v266_v31  ;;  %v434_v31 = vperm.slane %v432_v26, 0  ;;  %vm431_vm2 = vcmp.gt.s32.totalorder %v284_v30, 0 }
  0x8a   : > { %v433_v38 = vsel %vm431_vm2, 1, %v904_v25 }
  0x8b   : > { %316 = vmatmul.f32.vlgmr.msra.gmra.mxu0 %v282_v32  ;;  %vm436_vm3 = vcmp.eq.s32.totalorder %v434_v31, 1  ;;  %v435_v43 = vperm.slane %v433_v38, 0 }
  0x8c   : > { %336 = vmatmul.f32.vlgmr.msra.gmra.mxu1 %v282_v32 }
  0x8d   : > { %vm437_vm4 = vcmp.eq.s32.totalorder %v435_v43, 1 }
 0x108   : > { %v317_v47 = vpop.f32.mrf.mxu0 }
 0x109   : > { %v337_v48 = vpop.f32.mrf.mxu1  ;;  %v318_v49 = vadd.f32 %v317_v47, %v298_v45 }
 0x10a   : > { %v338_v50 = vadd.f32 %v337_v48, %v299_v46 }
 0x10b   : > { %v340_v51 = vrot.slane %v318_v49, 4  ;;  %v345_v52 = vperm.slane %v318_v49, %v1102_v35 }
 0x10c   : > { %v350_v53 = vrot.slane %v338_v50, 4  ;;  %v355_v54 = vperm.slane %v338_v50, %v1102_v35 }
 0x10d   : > { %v341_v55 = vsel %vm285_vm0, 0.0, %v340_v51  ;;  %v362_v56 = vrot.slane %v345_v52, 4 }
 0x10e   : > { %v351_v57 = vsel %vm285_vm0, 0.0, %v350_v53  ;;  %v360_v58 = vrot.slane %v355_v54, 4  ;;  %v349_v59 = vperm.slane %v341_v55, %v1102_v35 }
 0x10f   : > { %v359_v60 = vperm.slane %v351_v57, %v1102_v35  ;;  %v363_v62 = vsel %vm285_vm0, %v355_v54, %v362_v56 }
 0x110   : > { %v361_v61 = vsel %vm285_vm0, %v360_v58, %v345_v52  ;;  %v374_v63 = vrot.slane %v349_v59, 4  ;;  %v371_v1 = vperm.slane %v363_v62, %v295_v41 }
 0x111   : > { %v367_v0 = vperm.slane %v361_v61, %v295_v41  ;;  %v372_v2 = vrot.slane %v359_v60, 4 }
 0x112   : > { %v375_v4 = vsel %vm285_vm0, %v359_v60, %v374_v63  ;;  %v386_v6 = vrot.slane %v371_v1, 4 }
 0x113   : > { %v373_v3 = vsel %vm285_vm0, %v372_v2, %v349_v59  ;;  %v384_v5 = vrot.slane %v367_v0, 4  ;;  %v383_v8 = vperm.slane %v375_v4, %v295_v41 }
 0x114   : > { %v379_v7 = vperm.slane %v373_v3, %v295_v41  ;;  %v387_v9 = vsel %vm285_vm0, 0.0, %v386_v6  ;;  %v392_v20 = vsel %vm285_vm0, %v386_v6, %v367_v0 }
 0x115   : > { %v390_v11 = vrot.slane %v383_v8, 4  ;;  %v397_v12 = vrot.slane %v387_v9, 4  ;;  %v385_v14 = vsel %vm285_vm0, 0.0, %v384_v5  ;;  %v396_v27 = vperm.slane %v392_v20, %v1102_v35 }
 0x116   : > { %v388_v10 = vrot.slane %v379_v7, 4 }
 0x117   : > { %v391_v15 = vsel %vm285_vm0, 0.0, %v390_v11  ;;  %v398_v16 = vsel %vm285_vm0, %v397_v12, %v385_v14  ;;  %v403_v21 = vsel %vm285_vm0, %v390_v11, %v379_v7 }
 0x118   : > { %v408_v17 = vrot.slane %v391_v15, 4  ;;  %v402_v18 = vperm.slane %v398_v16, %v1102_v35  ;;  %v389_v19 = vsel %vm285_vm0, 0.0, %v388_v10  ;;  %v407_v28 = vperm.slane %v403_v21, %v1102_v35 }
 0x11a   : > { %v409_v22 = vsel %vm285_vm0, %v408_v17, %v389_v19  ;;  %v414_v24 = vrot.slane %v402_v18, 4 }
 0x11b   : > { %v413_v23 = vperm.slane %v409_v22, %v1102_v35 }
 0x11c   : > { %v415_v32 = vsel %vm285_vm0, %v414_v24, %v396_v27 }
 0x11d   : > { %v420_v29 = vrot.slane %v413_v23, 4  ;;  %v419_v36 = vperm.slane %v415_v32, %v295_v41 }
 0x11f   : > { %v421_v33 = vsel %vm285_vm0, %v420_v29, %v407_v28  ;;  %v428_v42 = vrot.slane %v419_v36, 4 }
 0x120   : > { %v425_v34 = vperm.slane %v421_v33, %v295_v41 }
 0x122   : > { %v426_v37 = vrot.slane %v425_v34, 4  ;;  %v429_v35 = vsel %vm285_vm0, %v425_v34, %v428_v42 }
 0x123   : > { %v439_v44 = vsel %vm437_vm4, %v429_v35, -inf }
 0x124   : > { %v427_v39 = vsel %vm285_vm0, %v426_v37, %v419_v36 }
 0x125   : > { %v438_v40 = vsel %vm436_vm3, %v427_v39, -inf }
 0x126   : > { %440 = vmax.xlane.f32.xlu0 %v438_v40 }
 0x12e   : > { %442 = vmax.xlane.f32.xlu0 %v439_v44 }
 0x199   : > { %v441_v45 = vpop.xlane.xlu0 %440 }
 0x19a   : > { %v444_v46 = vsub.f32 %v438_v40, %v441_v45 }
 0x19c   : > { %v446_v47 = vmul.f32 1.442695, %v444_v46 }
 0x19e   : > { %722 = vpow2.f32 %v446_v47 }
 0x1a1   : > { %v443_v48 = vpop.xlane.xlu0 %442 }
 0x1a2   : > { %v445_v41 = vsub.f32 %v439_v44, %v443_v48 }
 0x1a4   : > { %v723_v49 = vpop.eup %722  ;;  %v448_v50 = vmul.f32 1.442695, %v445_v41 }
 0x1a5   : > { %450 = vadd.xlane.f32.xlu1 %v723_v49  ;;  %470 = vmatmul.f32.vlgmr.msra.gmra.mxu2 %v723_v49 }
 0x1a6   : > { %724 = vpow2.f32 %v448_v50 }
 0x1ac   : > { %v725_v51 = vpop.eup %724 }
 0x1ad   : > { %452 = vadd.xlane.f32.xlu1 %v725_v51  ;;  %490 = vmatmul.f32.vlgmr.msra.gmra.mxu3 %v725_v51 }
 0x218   : > { %v451_v52 = vpop.xlane.xlu1 %450 }
 0x219   : > { %726 = vrcp.f32 %v451_v52 }
 0x21f   : > { %v727_v53 = vpop.eup %726 }
 0x220   : > { %v496_v54 = vmul.f32 %v727_v53, %v451_v52  ;;  %v453_v55 = vpop.xlane.xlu1 %452 }
 0x221   : > { %728 = vrcp.f32 %v453_v55 }
 0x222   : > { %v498_v56 = vsub.f32 2.0, %v496_v54 }
 0x224   : > { %v500_v58 = vmul.f32 %v727_v53, %v498_v56 }
 0x227   : > { %v729_v57 = vpop.eup %728 }
 0x228   : > { %v497_v59 = vmul.f32 %v729_v57, %v453_v55  ;;  %v471_v60 = vpop.f32.mrf.mxu2 }
 0x229   : > { %v502_v61 = vmul.f32 %v500_v58, %v471_v60 }
 0x22a   : > { %v499_v62 = vsub.f32 2.0, %v497_v59 }
 0x22b   : > { %504 = vst [vmem:[%s246_s7] sm:$0xff] %v502_v61 }
 0x22c   : > { %v501_v63 = vmul.f32 %v729_v57, %v499_v62 }
 0x230   : > { %v491_v0 = vpop.f32.mrf.mxu3 }
 0x231   : > { %v503_v1 = vmul.f32 %v501_v63, %v491_v0 }
 0x233   : > { %505 = vst [vmem:[%s246_s7 + $0x8] sm:$0xff] %v503_v1 }
 0x234   : > { %847 = shalt.err (!%p844_p5)
}
 0x235   : > { %s905_s19 = smov 128   ;;  %s906_s21 = smov 8  }
 0x236   : > { %658 = dma.vmem_to_hbm [thread:$0]  (%p979_p11), %s520_s5, 256, %s522_s17, %s507_s16, %s905_s19, %s905_s19, %s906_s21  }
 0x237 PF: > { %s536_s2 = sand.u32 1, %s882_s12   ;;  %p1185_p9 = scmp.ge.s32.totalorder %s894_s15, 2 }
 0x238   : > { %s537_s26 = scalar_lea.sflag [#allocation4], %s536_s2 }
 0x239   : > { %p672_p10 = pnand %p1185_p9, %p983_p12 }
 0x23b   : > { %p673_p1 = pneg %p672_p10 }
 0x23d   : > { %877 = dma.done.wait (%p673_p1), %s537_s26, 256  }
 0x23e   : > { %879 = vsyncadd (%p673_p1), %s537_s26, 4294967040  ;;  %s1186_s6 = sld [smem:[#allocation13_spill]]  ;;  %p19_p2 = scmp.ge.s32.totalorder %s952_s18, 4  }
 0x23f   : > { %s1187_s12 = smov %s886_s13  ;;  %s1188_s13 = smov %s890_s14 }
 0x240   : > { %s1190_s15 = smov %s952_s18  ;;  %21 = sbr.rel (!%p19_p2) target bundleno = 10 (0xa), region = 94 }
 0x244   : > { %s1189_s14 = smov %s1186_s6 }
 0x245   :  { %543 = vsyncpa [#allocation3], 1 }
 0x246   :  { %545 = vsyncpa [#allocation3 + $0x1], 1 }
 0x247   :  { %546 = vsyncpa [#allocation6], 1 }
 0x248   :  { %548 = vsyncpa [#allocation6 + $0x1], 1 }
 0x249   :  { %549 = vsyncpa [#allocation4], 1 }
 0x24a   :  { %551 = vsyncpa [#allocation4 + $0x1], 1 }

</bundles_post_ra>
